<compile_context>
chip_gen: v7x
topology: tpu7x:2x2x1
jax: 0.10.0
libtpu: 0.0.40
codegen_flags: <defaults>
</compile_context>

<pallas_src>
import functools

import jax
import jax.numpy as jnp
from jax.experimental import pallas as pl
from jax.experimental.pallas import tpu as pltpu


def _round_up(x, m):
    return ((x + m - 1) // m) * m


def _vmem_capacity_bytes():
    """Physical per-core VMEM; conservative fallback if the query fails."""
    try:
        cap = getattr(pltpu.get_tpu_info(), "vmem_capacity_bytes", None)
        if cap:
            return int(cap)
    except Exception:
        pass
    return 64 << 20  # v7x per-TensorCore capacity (most restrictive generation)


# -----------------------------------------------------------------------------
# Kernel A: folded (B*C, HW) layout — used when C is not a multiple of 8 so the
# streamed blocks are dense in the (8,128) tiling.
# -----------------------------------------------------------------------------
def _attention2d_folded_kernel(x_ref, w1r_ref, sel_ref, w2t_ref, b2_ref,
                               o_ref, acc_ref, *, inv_hw, inv_temp):
    # x_ref:   (b_tile*C, hw_tile)   streamed spatial tile (batch*channel rows)
    # w1r_ref: (b_tile*C, hidden)    fc1 weight^T replicated per batch row
    # sel_ref: (b_tile, b_tile*C)    0/1 batch-segment selector
    # w2t_ref: (hidden, K)           fc2 weight, pre-transposed
    # b2_ref:  (1, K)                fc2 bias
    # o_ref:   (b_tile, K)           softmax output (resident across HW axis)
    # acc_ref: (b_tile*C, 1) f32     pooled-sum accumulator scratch
    hw_idx = pl.program_id(1)

    @pl.when(hw_idx == 0)
    def _init():
        acc_ref[...] = jnp.zeros_like(acc_ref)

    # Partial AdaptiveAvgPool2d(1): accumulate the spatial sum of this tile.
    x = x_ref[...].astype(jnp.float32)                       # (BC, hw_tile)
    acc_ref[...] += jnp.sum(x, axis=-1, keepdims=True)       # (BC, 1)

    # Finalize (matmuls + softmax) only once per batch block, on the last step.
    @pl.when(hw_idx == pl.num_programs(1) - 1)
    def _finalize():
        pooled = acc_ref[...] * inv_hw                       # (BC, 1) mean
        # fc1 (1x1 conv, no bias) with NO in-kernel reshape of the folded acc:
        #   h[b, j] = sum_c pooled[b, c] * w1[j, c]
        #           = sum_r sel[b, r] * pooled_folded[r] * w1_rep[r, j]
        h = jnp.dot(sel_ref[...], pooled * w1r_ref[...],
                    preferred_element_type=jnp.float32)      # (b_tile, hidden)
        h = jnp.maximum(h, 0.0)                              # ReLU

        # fc2: 1x1 conv with bias.
        logits = jnp.dot(h, w2t_ref[...],
                         preferred_element_type=jnp.float32) # (b_tile, K)
        logits = logits + b2_ref[...]

        # softmax(logits / temperature, axis=1)
        z = logits * inv_temp
        z = z - jnp.max(z, axis=-1, keepdims=True)
        e = jnp.exp(z)
        denom = jnp.sum(e, axis=-1, keepdims=True)
        o_ref[...] = (e * pl.reciprocal(denom, approx=False)).astype(o_ref.dtype)


# -----------------------------------------------------------------------------
# Kernel B: (B, C, HW) layout — used when C is already a multiple of 8 (dense
# sublanes without folding; avoids the b_tile*C selector matrices at large C).
# -----------------------------------------------------------------------------
def _attention2d_kernel(x_ref, w1t_ref, w2t_ref, b2_ref, o_ref, acc_ref, *,
                        inv_hw, inv_temp):
    hw_idx = pl.program_id(1)

    @pl.when(hw_idx == 0)
    def _init():
        acc_ref[...] = jnp.zeros_like(acc_ref)

    x = x_ref[...].astype(jnp.float32)                       # (b_tile, C, hw)
    acc_ref[...] += jnp.sum(x, axis=-1)                      # (b_tile, C)

    @pl.when(hw_idx == pl.num_programs(1) - 1)
    def _finalize():
        pooled = acc_ref[...] * inv_hw                       # mean over H*W
        h = jnp.dot(pooled, w1t_ref[...],
                    preferred_element_type=jnp.float32)      # (b_tile, hidden)
        h = jnp.maximum(h, 0.0)
        logits = jnp.dot(h, w2t_ref[...],
                         preferred_element_type=jnp.float32) # (b_tile, K)
        logits = logits + b2_ref[...]
        z = logits * inv_temp
        z = z - jnp.max(z, axis=-1, keepdims=True)
        e = jnp.exp(z)
        denom = jnp.sum(e, axis=-1, keepdims=True)
        o_ref[...] = (e * pl.reciprocal(denom, approx=False)).astype(o_ref.dtype)


def attention2d_forward(x_nchw, w1, w2, b2, temperature, *,
                        hw_tile=None, b_tile=None):
    """x_nchw: (B, C, H, W); w1: (hidden, C); w2: (K, hidden); b2: (K,)."""
    B, C, H, W = x_nchw.shape
    hidden = w1.shape[0]
    K = w2.shape[0]
    HW = H * W
    itemsize = jnp.dtype(x_nchw.dtype).itemsize

    vmem_cap = _vmem_capacity_bytes()

    # ---- batch tile: big enough to amortize per-step overhead and fill more
    # MXU rows in the epilogue, but keep >=2 batch blocks when possible so the
    # "parallel" axis can spread over both v7x TensorCores.
    if b_tile is None:
        if B <= 8:
            b_tile = B
        else:
            b_up = _round_up(B, 8)
            b_tile = min(64, b_up)
            if b_up // b_tile < 2:                 # only one block -> split it
                b_tile = max(8, _round_up(b_up // 2, 8))
    b_pad = _round_up(B, b_tile)

    # Fold batch*channel into the sublane dim when C does not tile to 8 rows.
    fold_bc = (C % 8) != 0
    # VMEM rows of one x block (sublane padding only matters for the 3-D path).
    vmem_rows = b_tile * C if fold_bc else b_tile * _round_up(C, 8)

    # ---- spatial tile: sized by BYTES (multiple of 128 lanes).  2-4 MiB
    # blocks measure ~85-90% of HBM roofline; scale with VMEM capacity.
    hw_rounded = _round_up(HW, 128)
    if hw_tile is None:
        target_blk = max(2 << 20, min(8 << 20, vmem_cap // 16))
        max_tile = max(128, (target_blk // (vmem_rows * itemsize)) // 128 * 128)
        hw_tile = int(min(hw_rounded, max_tile))
    hw_pad = _round_up(HW, hw_tile)

    # ---- pad input (zeros do not change the spatial sum; we divide by the
    # true H*W and slice padded batch rows off the output).
    x_flat = x_nchw.reshape(B, C, HW)
    if hw_pad != HW or b_pad != B:
        x_flat = jnp.pad(x_flat, ((0, b_pad - B), (0, 0), (0, hw_pad - HW)))

    # ---- one-time weight prep in XLA (no in-kernel transpose / cast).
    w1t = w1.astype(jnp.float32).T                 # (C, hidden)
    w2t = w2.astype(jnp.float32).T                 # (hidden, K)
    b2_2d = b2.astype(jnp.float32).reshape(1, K)

    inv_hw = 1.0 / float(HW)
    inv_temp = 1.0 / float(temperature)
    grid = (b_pad // b_tile, hw_pad // hw_tile)

    # ---- VMEM limit: derived from the chip's capacity (headroom on v7x's
    # 64 MiB, larger budget on v5e/v6e's 128 MiB).
    x_blk_bytes = vmem_rows * hw_tile * itemsize
    need = 2 * x_blk_bytes + (4 << 20)             # double-buffered x + misc
    cap = min((vmem_cap * 5) // 8, 96 << 20)       # ~40 MiB v7x / ~80 MiB v5e,v6e
    vmem_bytes = int(min(max(need, 16 << 20), cap))

    cost = pl.CostEstimate(
        flops=int(2 * B * C * HW + 2 * B * (C * hidden + hidden * K)),
        transcendentals=int(B * K),
        bytes_accessed=int(b_pad * C * hw_pad * itemsize + B * K * itemsize),
    )
    cparams = pltpu.CompilerParams(
        dimension_semantics=("parallel", "arbitrary"),
        vmem_limit_bytes=vmem_bytes)

    if fold_bc:
        bc = b_tile * C
        x_2d = x_flat.reshape(b_pad * C, hw_pad)
        # fc1 weight replicated per batch row + 0/1 batch-segment selector so
        # the epilogue needs no in-kernel reshape of the folded accumulator.
        w1_rep = jnp.tile(w1t, (b_tile, 1))                        # (bc, hidden)
        sel = (jnp.arange(bc)[None, :] // C ==
               jnp.arange(b_tile)[:, None]).astype(jnp.float32)    # (b_tile, bc)

        kernel = functools.partial(_attention2d_folded_kernel,
                                   inv_hw=inv_hw, inv_temp=inv_temp)
        out = pl.pallas_call(
            kernel,
            out_shape=jax.ShapeDtypeStruct((b_pad, K), x_nchw.dtype),
            grid_spec=pltpu.PrefetchScalarGridSpec(
                num_scalar_prefetch=0,
                grid=grid,
                in_specs=[
                    pl.BlockSpec((bc, hw_tile), lambda bi, hw: (bi, hw)),
                    pl.BlockSpec((bc, hidden), lambda bi, hw: (0, 0)),
                    pl.BlockSpec((b_tile, bc), lambda bi, hw: (0, 0)),
                    pl.BlockSpec((hidden, K), lambda bi, hw: (0, 0)),
                    pl.BlockSpec((1, K), lambda bi, hw: (0, 0)),
                ],
                out_specs=pl.BlockSpec((b_tile, K), lambda bi, hw: (bi, 0)),
                scratch_shapes=[pltpu.VMEM((bc, 1), jnp.float32)],
            ),
            compiler_params=cparams,
            cost_estimate=cost,
        )(x_2d, w1_rep, sel, w2t, b2_2d)
    else:
        kernel = functools.partial(_attention2d_kernel,
                                   inv_hw=inv_hw, inv_temp=inv_temp)
        out = pl.pallas_call(
            kernel,
            out_shape=jax.ShapeDtypeStruct((b_pad, K), x_nchw.dtype),
            grid_spec=pltpu.PrefetchScalarGridSpec(
                num_scalar_prefetch=0,
                grid=grid,
                in_specs=[
                    pl.BlockSpec((b_tile, C, hw_tile), lambda bi, hw: (bi, 0, hw)),
                    pl.BlockSpec((C, hidden), lambda bi, hw: (0, 0)),
                    pl.BlockSpec((hidden, K), lambda bi, hw: (0, 0)),
                    pl.BlockSpec((1, K), lambda bi, hw: (0, 0)),
                ],
                out_specs=pl.BlockSpec((b_tile, K), lambda bi, hw: (bi, 0)),
                scratch_shapes=[pltpu.VMEM((b_tile, C), jnp.float32)],
            ),
            compiler_params=cparams,
            cost_estimate=cost,
        )(x_flat, w1t, w2t, b2_2d)

    return out[:B]


def _reference(x, w1, w2, b2, temperature):
    pooled = jnp.mean(x.astype(jnp.float32), axis=(2, 3))     # (B, C)
    h = jnp.maximum(pooled @ w1.astype(jnp.float32).T, 0.0)   # (B, hidden)
    logits = h @ w2.astype(jnp.float32).T + b2[None, :]       # (B, K)
    return jax.nn.softmax(logits / temperature, axis=1)


if __name__ == "__main__":
    def run_case(B, C, H, W, ratios, K, temperature, key):
        hidden = int(C * ratios) + 1 if C != 3 else K
        kx, kw1, kw2 = jax.random.split(key, 3)
        x = jax.random.normal(kx, (B, C, H, W), dtype=jnp.float32)
        # Kaiming-normal, mode='fan_out', relu gain for 1x1 convs; bias zero.
        w1 = jax.random.normal(kw1, (hidden, C), jnp.float32) * jnp.sqrt(2.0 / hidden)
        w2 = jax.random.normal(kw2, (K, hidden), jnp.float32) * jnp.sqrt(2.0 / K)
        b2 = jnp.zeros((K,), jnp.float32)
        ref = _reference(x, w1, w2, b2, temperature)
        # hw_tile=128 forces 2 reduction steps (exercises the accumulator path);
        # None uses the byte-targeted auto tiling.
        for hw_tile in (128, None):
            out = attention2d_forward(x, w1, w2, b2, temperature, hw_tile=hw_tile)
            out = jax.block_until_ready(out)
            assert out.shape == (B, K)
            assert jnp.allclose(out, ref, atol=1e-5, rtol=1e-5), (out, ref)
            assert jnp.allclose(jnp.sum(out, axis=1), 1.0, atol=1e-5)

    key = jax.random.PRNGKey(0)
    k1, k2 = jax.random.split(key)
    # Module config: in_channels=4, ratios=0.25 -> hidden = 2, K=4,
    # temperature=4 (temperature % 3 == 1).  C=4 exercises the folded
    # (B*C, HW) path.
    run_case(B=2, C=4, H=16, W=16, ratios=0.25, K=4, temperature=4, key=k1)
    # C=8 exercises the unfolded (B, C, HW) path.
    run_case(B=2, C=8, H=16, W=16, ratios=0.25, K=4, temperature=4, key=k2)

    print("KERNEL_OK")
</pallas_src>

<mosaic_0001>
module attributes {stable_mosaic.version = 11 : i64} {
  func.func @_attention2d_folded_kernel(%arg0: i32, %arg1: i32, %arg2: memref<8x128xf32, #tpu.memory_space<vmem>>, %arg3: memref<8x2xf32, #tpu.memory_space<vmem>>, %arg4: memref<2x8xf32, #tpu.memory_space<vmem>>, %arg5: memref<2x4xf32, #tpu.memory_space<vmem>>, %arg6: memref<1x4xf32, #tpu.memory_space<vmem>>, %arg7: memref<2x4xf32, #tpu.memory_space<vmem>>, %arg8: memref<8x1xf32, #tpu.memory_space<vmem>>) attributes {dimension_semantics = [#tpu.dimension_semantics<parallel>, #tpu.dimension_semantics<arbitrary>], iteration_bounds = array<i64: 1, 2>, scalar_prefetch = 0 : i64, scratch_operands = 1 : i64, tpu.core_type = #tpu.core_type<tc>, window_params = [{transform_indices = @transform_0, window_bounds = array<i64: 8, 128>}, {pipeline_mode = #tpu.pipeline_mode<synchronous>, transform_indices = @transform_1, window_bounds = array<i64: 8, 2>}, {pipeline_mode = #tpu.pipeline_mode<synchronous>, transform_indices = @transform_2, window_bounds = array<i64: 2, 8>}, {pipeline_mode = #tpu.pipeline_mode<synchronous>, transform_indices = @transform_3, window_bounds = array<i64: 2, 4>}, {pipeline_mode = #tpu.pipeline_mode<synchronous>, transform_indices = @transform_4, window_bounds = array<i64: 1, 4>}, {transform_indices = @transform_5, window_bounds = array<i64: 2, 4>}]} {
    %c0_i32 = arith.constant 0 : i32
    %0 = arith.cmpi eq, %arg1, %c0_i32 : i32
    %1 = arith.extui %0 : i1 to i32
    %c0_i32_0 = arith.constant 0 : i32
    %2 = arith.cmpi ne, %1, %c0_i32_0 : i32
    scf.if %2 {
      %cst_7 = arith.constant 0.000000e+00 : f32
      %12 = vector.broadcast %cst_7 : f32 to vector<8x1xf32>
      %c0_8 = arith.constant 0 : index
      %c0_9 = arith.constant 0 : index
      %13 = vector.load %arg8[%c0_8, %c0_9] : memref<8x1xf32, #tpu.memory_space<vmem>>, vector<8x1xf32>
      tpu.vector_store %arg8[%c0_8, %c0_9], %12 {strides = array<i32>} : memref<8x1xf32, #tpu.memory_space<vmem>>, vector<8x1xf32>,
    } else {
    }
    %c0 = arith.constant 0 : index
    %c0_1 = arith.constant 0 : index
    %3 = vector.load %arg2[%c0, %c0_1] : memref<8x128xf32, #tpu.memory_space<vmem>>, vector<8x128xf32>
    %c0_2 = arith.constant 0 : index
    %c0_3 = arith.constant 0 : index
    %4 = vector.load %arg8[%c0_2, %c0_3] : memref<8x1xf32, #tpu.memory_space<vmem>>, vector<8x1xf32>
    %cst = arith.constant dense<0.000000e+00> : vector<8xf32>
    %5 = vector.multi_reduction <add>, %3, %cst [1] : vector<8x128xf32> to vector<8xf32>
    %6 = vector.shape_cast %5 : vector<8xf32> to vector<8x1xf32>
    %7 = arith.addf %4, %6 : vector<8x1xf32>
    %c0_4 = arith.constant 0 : index
    %c0_5 = arith.constant 0 : index
    %8 = vector.load %arg8[%c0_4, %c0_5] : memref<8x1xf32, #tpu.memory_space<vmem>>, vector<8x1xf32>
    tpu.vector_store %arg8[%c0_4, %c0_5], %7 {strides = array<i32>} : memref<8x1xf32, #tpu.memory_space<vmem>>, vector<8x1xf32>,
    %c1_i32 = arith.constant 1 : i32
    %9 = arith.cmpi eq, %arg1, %c1_i32 : i32
    %10 = arith.extui %9 : i1 to i32
    %c0_i32_6 = arith.constant 0 : i32
    %11 = arith.cmpi ne, %10, %c0_i32_6 : i32
    scf.if %11 {
      %c0_7 = arith.constant 0 : index
      %c0_8 = arith.constant 0 : index
      %12 = vector.load %arg8[%c0_7, %c0_8] : memref<8x1xf32, #tpu.memory_space<vmem>>, vector<8x1xf32>
      %cst_9 = arith.constant 3.906250e-03 : f32
      %13 = vector.broadcast %cst_9 : f32 to vector<8x1xf32>
      %14 = arith.mulf %12, %13 : vector<8x1xf32>
      %c0_10 = arith.constant 0 : index
      %c0_11 = arith.constant 0 : index
      %15 = vector.load %arg4[%c0_10, %c0_11] : memref<2x8xf32, #tpu.memory_space<vmem>>, vector<2x8xf32>
      %c0_12 = arith.constant 0 : index
      %c0_13 = arith.constant 0 : index
      %16 = vector.load %arg3[%c0_12, %c0_13] : memref<8x2xf32, #tpu.memory_space<vmem>>, vector<8x2xf32>
      %17 = vector.broadcast %14 : vector<8x1xf32> to vector<8x2xf32>
      %18 = arith.mulf %17, %16 : vector<8x2xf32>
      %cst_14 = arith.constant dense<0.000000e+00> : vector<2x2xf32>
      %19 = tpu.matmul %15, %18, %cst_14 {dimension_numbers = #tpu.dot_dimension_numbers<[1], [0], [0], [1], [0, 0, 1, 1], [], []>} : vector<2x8xf32>, vector<8x2xf32>, vector<2x2xf32> -> vector<2x2xf32>
      %cst_15 = arith.constant 0.000000e+00 : f32
      %20 = vector.broadcast %cst_15 : f32 to vector<2x2xf32>
      %21 = arith.maximumf %19, %20 : vector<2x2xf32>
      %c0_16 = arith.constant 0 : index
      %c0_17 = arith.constant 0 : index
      %22 = vector.load %arg5[%c0_16, %c0_17] : memref<2x4xf32, #tpu.memory_space<vmem>>, vector<2x4xf32>
      %cst_18 = arith.constant dense<0.000000e+00> : vector<2x4xf32>
      %23 = tpu.matmul %21, %22, %cst_18 {dimension_numbers = #tpu.dot_dimension_numbers<[1], [0], [0], [1], [0, 0, 1, 1], [], []>} : vector<2x2xf32>, vector<2x4xf32>, vector<2x4xf32> -> vector<2x4xf32>
      %c0_19 = arith.constant 0 : index
      %c0_20 = arith.constant 0 : index
      %24 = vector.load %arg6[%c0_19, %c0_20] : memref<1x4xf32, #tpu.memory_space<vmem>>, vector<1x4xf32>
      %25 = vector.broadcast %24 : vector<1x4xf32> to vector<2x4xf32>
      %26 = arith.addf %23, %25 : vector<2x4xf32>
      %cst_21 = arith.constant 2.500000e-01 : f32
      %27 = vector.broadcast %cst_21 : f32 to vector<2x4xf32>
      %28 = arith.mulf %26, %27 : vector<2x4xf32>
      %cst_22 = arith.constant dense<0xFF800000> : vector<2xf32>
      %29 = vector.multi_reduction <maximumf>, %28, %cst_22 [1] : vector<2x4xf32> to vector<2xf32>
      %30 = vector.shape_cast %29 : vector<2xf32> to vector<2x1xf32>
      %31 = vector.broadcast %30 : vector<2x1xf32> to vector<2x4xf32>
      %32 = arith.subf %28, %31 : vector<2x4xf32>
      %33 = math.exp %32 : vector<2x4xf32>
      %cst_23 = arith.constant dense<0.000000e+00> : vector<2xf32>
      %34 = vector.multi_reduction <add>, %33, %cst_23 [1] : vector<2x4xf32> to vector<2xf32>
      %35 = vector.shape_cast %34 : vector<2xf32> to vector<2x1xf32>
      %36 = tpu.reciprocal %35 : vector<2x1xf32> -> vector<2x1xf32>
      %37 = vector.broadcast %36 : vector<2x1xf32> to vector<2x4xf32>
      %38 = arith.mulf %33, %37 : vector<2x4xf32>
      %c0_24 = arith.constant 0 : index
      %c0_25 = arith.constant 0 : index
      %39 = vector.load %arg7[%c0_24, %c0_25] : memref<2x4xf32, #tpu.memory_space<vmem>>, vector<2x4xf32>
      tpu.vector_store %arg7[%c0_24, %c0_25], %38 {strides = array<i32>} : memref<2x4xf32, #tpu.memory_space<vmem>>, vector<2x4xf32>,
    } else {
    }
    return
  }
  func.func @transform_0(%arg0: i32, %arg1: i32) -> (i32, i32) {
    %c0_i32 = arith.constant 0 : i32
    return %arg0, %arg1 : i32, i32
  }
  func.func @transform_1(%arg0: i32, %arg1: i32) -> (i32, i32) {
    %c0_i32 = arith.constant 0 : i32
    %c0_i32_0 = arith.constant 0 : i32
    %c0_i32_1 = arith.constant 0 : i32
    return %c0_i32, %c0_i32_0 : i32, i32
  }
  func.func @transform_2(%arg0: i32, %arg1: i32) -> (i32, i32) {
    %c0_i32 = arith.constant 0 : i32
    %c0_i32_0 = arith.constant 0 : i32
    %c0_i32_1 = arith.constant 0 : i32
    return %c0_i32, %c0_i32_0 : i32, i32
  }
  func.func @transform_3(%arg0: i32, %arg1: i32) -> (i32, i32) {
    %c0_i32 = arith.constant 0 : i32
    %c0_i32_0 = arith.constant 0 : i32
    %c0_i32_1 = arith.constant 0 : i32
    return %c0_i32, %c0_i32_0 : i32, i32
  }
  func.func @transform_4(%arg0: i32, %arg1: i32) -> (i32, i32) {
    %c0_i32 = arith.constant 0 : i32
    %c0_i32_0 = arith.constant 0 : i32
    %c0_i32_1 = arith.constant 0 : i32
    return %c0_i32, %c0_i32_0 : i32, i32
  }
  func.func @transform_5(%arg0: i32, %arg1: i32) -> (i32, i32) {
    %c0_i32 = arith.constant 0 : i32
    %c0_i32_0 = arith.constant 0 : i32
    return %arg0, %c0_i32 : i32, i32
  }
}

</mosaic_0001>

<bundles_post_ra>
// kernel: tpu_custom_call.1
= control target key start
LH: loop header
LB: loop body
LE: loop exit
PB: predicated region body
PF: predicated region fallthrough
CT: control target
= control target key end

     0   :  { %10 = vsyncpa [#allocation4], 0  ;;  %s937_s0 = inlined_call_operand.hbm [shape: f32[8,256], index: 0, kind: input, shape index: {}]   ;;  %s938_s1 = inlined_call_operand.vmem [shape: f32[8,2], index: 1, kind: input, shape index: {}]   ;;  %s939_s2 = inlined_call_operand.vmem [shape: f32[2,8], index: 2, kind: input, shape index: {}]   ;;  %s940_s3 = inlined_call_operand.vmem [shape: f32[2,4], index: 3, kind: input, shape index: {}]   ;;  %s941_s4 = inlined_call_operand.vmem [shape: f32[1,4], index: 4, kind: input, shape index: {}]   ;;  %s942_s5 = inlined_call_operand.hbm [shape: f32[2,4], index: 5, kind: output, shape index: {}]  }
   0x1   :  { %12 = vsyncpa [#allocation4 + $0x1], 0 }
   0x2   :  { %13 = vsyncpa [#allocation5], 0  ;;  %s773_s18 = smov 0   ;;  %s775_s19 = smov 0  }
   0x3   :  { %s777_s20 = smov 0   ;;  %s779_s21 = smov 0  }
   0x4   :  { %s781_s22 = smov 0   ;;  %s783_s23 = smov 0  }
   0x5 LB: > { %s523_s24 = sadd.s32 4294967295, %s735_s23   ;;  %s28_s25 = sadd.s32 1, %s731_s22  ;;  %s735_s23 = sphi %s783_s23, %s19_s23   ;;  %s731_s22 = sphi %s781_s22, %s953_s22   ;;  %s727_s21 = sphi %s779_s21, %s952_s21   ;;  %s723_s20 = sphi %s777_s20, %s951_s20   ;;  %s719_s19 = sphi %s775_s19, %s950_s19   ;;  %s715_s18 = sphi %s773_s18, %s949_s18  }
   0x6   : > { %p29_p0 = scmp.ge.s32.totalorder %s28_s25, 2  ;;  %s40_s26 = sadd.s32 1, %s723_s20 }
   0x7   : > { %p47_p1 = scmp.ne.s32.totalorder %s723_s20, %s719_s19  ;;  %p48_p2 = scmp.eq.s32.totalorder %s735_s23, 0 }
   0x8   : > { %s955_s25 = smov (%p29_p0, %s28_s25), 0  ;;  %p53_p4 = scmp.ne.s32.totalorder %s719_s19, %s715_s18 }
   0x9   : > { %p809_p3 = por %p48_p2, %p47_p1  ;;  %s36_s28 = ssub.s32 %s731_s22, %s955_s25 }
   0xa   : > { %p54_p5 = scmp.eq.s32.totalorder %s523_s24, 0  ;;  %p38_p6 = scmp.eq.s32.totalorder %s36_s28, 0 }
   0xb   : > { %p564_p8 = scmp.lt.s32.totalorder %s735_s23, 2  ;;  %s199_s6 = sand.u32 1, %s723_s20  }
   0xc   : > { %p818_p7 = por %p54_p5, %p53_p4  ;;  %s527_s7 = sshll.u32 %s731_s22, 7 }
   0xd   : > { %s824_s30 = scalar_select %p38_p6, %s723_s20, %s40_s26  }
   0xe   : > { %s526_s8 = sshll.u32 %s199_s6, 3  ;;  %s831_s11 = scalar_lea.hbm %s937_s0, %s527_s7 }
   0xf   : > { %s203_s12 = scalar_lea.vmem [#allocation3], %s526_s8  ;;  %p835_p9 = pnand %p564_p8, %p809_p3 }
  0x10   : > { %s212_s13 = sshll.u32 %s203_s12, 4  ;;  %s200_s15 = scalar_lea.sflag [#allocation4], %s199_s6  ;;  %s839_s13 = int_to_ptr.vmem [resolvable:$true] %s212_s13 }
  0x11   : > { %s625_s16 = scalar_lea.hbm %s831_s11, 128  ;;  %p627_p13 = pneg %p835_p9 }
  0x12   : > { %p626_p12 = scmp.ne.s32.totalorder %s831_s11, %s625_s16  ;;  %s630_s26 = scalar_lea.hbm %s937_s0, 256 }
  0x13   : > { %p631_p2 = scmp.lt.u32.totalorder %s831_s11, %s937_s0  ;;  %p632_p3 = scmp.lt.u32.totalorder %s630_s26, %s625_s16 }
  0x14   : > { %p628_p0 = pnand %p627_p13, %p626_p12  ;;  %p634_p5 = scmp.lt.u32.totalorder %s625_s16, %s831_s11 }
  0x15   : > { %p633_p4 = por %p632_p3, %p631_p2 }
  0x16   : > { %p629_p1 = pneg %p628_p0 }
  0x17   : > { %p635_p6 = por %p634_p5, %p633_p4 }
  0x19   : > { %p636_p8 = pnand %p635_p6, %p629_p1 }
  0x1b   : > { %639 = shalt.err (!%p636_p8)
}
  0x1c   : > { %s640_s6 = scalar_lea.vmem %s839_s13, 128  ;;  %s737_s7 = smov [#allocation3]  }
  0x1d   : > { %p641_p12 = scmp.ne.s32.totalorder %s839_s13, %s640_s6  ;;  %s645_s8 = sshll.u32 %s737_s7, 4  ;;  %s646_s8 = int_to_ptr.vmem [resolvable:$false] %s645_s8 }
  0x1e   : > { %s647_s9 = scalar_lea.vmem %s646_s8, 256  ;;  %p648_p11 = scmp.lt.s32.totalorder %s839_s13, %s646_s8 }
  0x1f   : > { %p643_p0 = pnand %p641_p12, %p627_p13  ;;  %p649_p2 = scmp.lt.s32.totalorder %s647_s9, %s640_s6 }
  0x21   : > { %p644_p10 = pneg %p643_p0  ;;  %p650_p3 = por %p649_p2, %p648_p11 }
  0x23   : > { %p651_p4 = pnand %p650_p3, %p644_p10 }
  0x25   : > { %654 = shalt.err (!%p651_p4)
}
  0x26   : > { %563 = dma.hbm_to_vmem [thread:$0]  (!%p835_p9), %s831_s11, 128, %s839_s13, %s200_s15  }
  0x27   : > { %p946_p1 = scmp.lt.s32.totalorder %s735_s23, 3  ;;  %p947_p5 = scmp.ge.s32.totalorder %s735_s23, 1 }
  0x29   : > { %p218_p13 = pnand %p947_p5, %p946_p1 }
  0x2a   : > { %s223_s10 = sand.u32 (!%p218_p13), 1, %s719_s19  }
  0x2b   : > { %221 = sbr.rel (%p218_p13) target bundleno = 1116 (0x45c), region = 40  ;;  %s529_s12 = sshll.u32 (!%p218_p13), %s223_s10, 3 }
  0x2c   : > { %s224_s16 = scalar_lea.sflag (!%p218_p13), [#allocation4], %s223_s10  ;;  %s227_s17 = scalar_lea.vmem (!%p218_p13), [#allocation3], %s529_s12 }
  0x32   : > { %706 = dma.done.wait (%p818_p7), %s224_s16, 128  }
  0x33   : > { %708 = vsyncadd (%p818_p7), %s224_s16, 4294967168  ;;  %p530_p10 = scmp.ne.s32.totalorder %s727_s21, 0 }
  0x34   : > { %vm253_vm0 = vcmask (!%p530_p10), 7168   ;;  %v738_v0 = vmov (!%p530_p10), 0.0  }
  0x35   : > { %252 = sbr.rel (%p530_p10) target bundleno = 60 (0x3c), region = 48  ;;  %254 = vst.msk [vmem:[#allocation2] sm:$0xff] (!%p530_p10), %vm253_vm0, %v738_v0 }
  0x3c PF: > { %v255_v1 = vld [vmem:[%s227_s17] sm:$0xff]  ;;  %v256_v2 = vld [vmem:[#allocation2] sm:$0xff]  ;;  %vm260_vm1 = vcmask 7168   ;;  %p531_p9 = scmp.ne.s32.totalorder %s727_s21, 1 }
  0x3d   : > { %257 = vadd.xlane.f32.xlu0 %v255_v1  ;;  %v739_v6 = vmov (!%p531_p9), 0   ;;  %v740_v8 = vmov (!%p531_p9), 0.0   ;;  %vm741_vm2 = vmmov (!%p531_p9), 0   ;;  %v269_v9 = vld [vmem:[%s938_s1] sm:$0xff] (!%p531_p9)  ;;  %vm276_vm3 = vcmask (!%p531_p9), 64512  }
  0x3e   : > { %620 = vset.pattern.permute.xlu0 (!%p531_p9), %v739_v6  ;;  %544 = vmatprep.subr.mxu0 (!%p531_p9), %v740_v8  ;;  %v268_v12 = vld [vmem:[%s939_s2] sm:$0x3] (!%p531_p9)  ;;  %vm363_vm4 = vcmask (!%p531_p9), 1041408   ;;  %vm359_vm5 = vcmask (!%p531_p9), 15360   ;;  %vm438_vm6 = vcmask (!%p531_p9), 25600  }
  0x3f   : > { %549 = vmatprep.subr.mxu1 (!%p531_p9), %v740_v8  ;;  %546 = vmatprep.mubr.msk.f32.mxu0 (!%p531_p9), %vm741_vm2, %v740_v8  ;;  %v351_v13 = vld [vmem:[%s940_s3] sm:$0x3] (!%p531_p9) }
  0x40   : > { %551 = vmatprep.mubr.msk.f32.mxu1 (!%p531_p9), %vm741_vm2, %v740_v8  ;;  %550 = vmatpush3.msk.msra.mxu1 (!%p531_p9), %vm363_vm4, %v351_v13  ;;  %v533_v17 = vld [vmem:[%s941_s4] ss:$0 sm:$0xff] (!%p531_p9) }
  0xc7   : > { %265 = sbr.rel (%p531_p9) target bundleno = 1091 (0x443), region = 52 }
  0xca   : > { %v258_v3 = vpop.xlane.xlu0 %257 }
  0xcb   : > { %v259_v4 = vadd.f32 %v258_v3, %v256_v2 }
  0xcd   : > { %261 = vst.msk [vmem:[#allocation2] sm:$0xff] %vm260_vm1, %v259_v4 }
  0xd4   : > { %v266_v5 = vld [vmem:[#allocation2] sm:$0xff] }
  0xd5   : > { %v267_v7 = vmul.f32 0.00390625, %v266_v5 }
  0xd7   : > { %272 = vperm.xlu0 %620, %v267_v7  }
 0x156   : > { %v273_v10 = vpop.permute.xlu0 %272 }
 0x157   : > { %v275_v11 = vmul.f32 %v273_v10, %v269_v9 }
 0x159   : > { %545 = vmatpush3.msra.mxu0 %v275_v11 }
 0x15a   : > { %547 = vmatmul.mubr.msk.f32.vlgmr.msra.gmra.mrb[0].mxu0 %vm276_vm3, %v268_v12 }
 0x22d   : > { %v346_v14 = vpop.f32.mrb[0].mxu0 }
 0x22e   : > { %v350_v15 = vmax.f32 %v346_v14, 0.0  ;;  %v548_v16 = vpop.f32.mrb[1].mxu0 }
 0x230   : > { %552 = vmatmul.mubr.msk.f32.vlgmr.msra.gmra.mrb[0].mxu1 %vm359_vm5, %v350_v15 }
 0x303   : > { %v433_v18 = vpop.f32.mrb[0].mxu1 }
 0x304   : > { %v434_v19 = vadd.f32 %v533_v17, %v433_v18  ;;  %v553_v20 = vpop.f32.mrb[1].mxu1 }
 0x306   : > { %v437_v21 = vmul.f32 0.25, %v434_v19 }
 0x308   : > { %v439_v22 = vsel %vm438_vm6, %v437_v21, -inf }
 0x309   : > { %440 = vmax.xlane.f32.xlu0 %v439_v22 }
 0x396   : > { %v441_v23 = vpop.xlane.xlu0 %440 }
 0x397   : > { %v442_v24 = vsub.f32 %v437_v21, %v441_v23 }
 0x399   : > { %v443_v25 = vmul.f32 1.442695, %v442_v24 }
 0x39b   : > { %621 = vpow2.f32 %v443_v25 }
 0x3a5   : > { %v622_v26 = vpop.eup %621 }
 0x3a6   : > { %v445_v27 = vsel %vm438_vm6, %v622_v26, 0.0 }
 0x3a7   : > { %446 = vadd.xlane.f32.xlu1 %v445_v27 }
 0x434   : > { %v447_v28 = vpop.xlane.xlu1 %446 }
 0x435   : > { %623 = vrcp.f32 %v447_v28 }
 0x43f   : > { %v624_v29 = vpop.eup %623 }
 0x440   : > { %v449_v30 = vmul.f32 %v624_v29, %v622_v26 }
 0x442   : > { %450 = vst.msk [vmem:[#allocation6] sm:$0x3] %vm438_vm6, %v449_v30 }
 0x443 PF: > { %p893_p7 = scmp.eq.s32.totalorder %s523_s24, 1  ;;  %s742_s28 = smov [#allocation6]  }
 0x444   : > { %s460_s6 = sshll.u32 %s742_s28, 4  ;;  %s461_s6 = int_to_ptr.vmem [resolvable:$true] %s460_s6 }
 0x445   : > { %s655_s7 = scalar_lea.vmem %s461_s6, 32  ;;  %p662_p12 = scmp.lt.s32.totalorder %s461_s6, %s461_s6 }
 0x446   : > { %p656_p11 = scmp.ne.s32.totalorder %s461_s6, %s655_s7  ;;  %p663_p0 = scmp.lt.s32.totalorder %s655_s7, %s655_s7 }
 0x448   : > { %p657_p6 = pnand %p656_p11, %p893_p7  ;;  %p664_p2 = por %p663_p0, %p662_p12 }
 0x44a   : > { %p658_p8 = pneg %p657_p6 }
 0x44c   : > { %p665_p3 = pnand %p664_p2, %p658_p8 }
 0x44e   : > { %668 = shalt.err (!%p665_p3)
}
 0x44f   : > { %s669_s24 = scalar_lea.hbm %s942_s5, 32 }
 0x450   : > { %p670_p4 = scmp.ne.s32.totalorder %s942_s5, %s669_s24  ;;  %p675_p13 = scmp.lt.u32.totalorder %s669_s24, %s942_s5 }
 0x452   : > { %p671_p1 = pnand %p670_p4, %p893_p7 }
 0x454   : > { %p672_p5 = pneg %p671_p1 }
 0x456   : > { %p677_p10 = pnand %p675_p13, %p672_p5 }
 0x458   : > { %680 = shalt.err (!%p677_p10)
}
 0x459   : > { %557 = dma.vmem_to_hbm [thread:$0]  (%p893_p7), %s461_s6, 32, %s942_s5, [#allocation5]  }
 0x45a   : > { %710 = dma.done.wait (%p893_p7), [#allocation5], 32  }
 0x45b   : > { %712 = vsyncadd (%p893_p7), [#allocation5], 4294967264 }
 0x45c PF: > { %s19_s23 = sadd.s32 1, %s735_s23   ;;  %s949_s18 = smov %s719_s19 }
 0x45d   : > { %p16_p9 = scmp.ge.s32.totalorder %s19_s23, 4   ;;  %s950_s19 = smov %s723_s20 }
 0x45e   : > { %s951_s20 = smov %s824_s30  ;;  %s952_s21 = smov %s731_s22 }
 0x45f   : > { %s953_s22 = smov %s955_s25  ;;  %18 = sbr.rel (!%p16_p9) target bundleno = 5 (0x5), region = 86 }
 0x466   :  { %473 = vsyncpa [#allocation4], 1 }
 0x467   :  { %475 = vsyncpa [#allocation4 + $0x1], 1 }
 0x468   :  { %476 = vsyncpa [#allocation5], 1 }
 0x469   :  { %478 = vsyncpa [#allocation5 + $0x1], 1 }

</bundles_post_ra>
